<compile_context>
chip_gen: v7x
topology: tpu7x:2x2x1
jax: 0.10.0
libtpu: 0.0.40
codegen_flags: <defaults>
</compile_context>

<pallas_src>
import math
from functools import partial

import jax
import jax.numpy as jnp
from jax.experimental import pallas as pl
from jax.experimental.pallas import tpu as pltpu


# ---------------------------------------------------------------------------
# Fused Pallas kernel (hot path): feat_enc + attention scores + per-batch row max
# ---------------------------------------------------------------------------
def _dvsa_fused_kernel(x_ref, w_ref, b_ref, kt_ref, out_ref, *, tp, m_total, tm):
    i = pl.program_id(0)

    # Output is a tiny (8, 128) max-accumulator resident across the M grid axis.
    @pl.when(i == 0)
    def _():
        out_ref[...] = jnp.zeros_like(out_ref)

    # feat_enc: Linear (bf16 MXU operands, f32 accumulate) + Dropout(eval identity) + ReLU.
    x_enc = jnp.dot(x_ref[...], w_ref[...], preferred_element_type=jnp.float32)
    x_enc = jnp.maximum(x_enc + b_ref[...], 0.0)

    # Attention scores against all packed keys in one MXU pass; 1/sqrt(C) is pre-folded
    # into kt, so no in-kernel scalar multiply.  Sigmoid stays f32 (EUP).
    s = jnp.dot(x_enc.astype(jnp.bfloat16), kt_ref[...],
                preferred_element_type=jnp.float32)
    s = jax.nn.sigmoid(s)                                     # (tm, 128) f32

    nk = s.shape[1]
    # Global row index -> batch-0 / batch-1 membership (also masks any ragged last tile).
    row = tm * i + jax.lax.broadcasted_iota(jnp.int32, (tm, nk), 0)
    in_b0 = row < tp                                          # rows of x_o[0]
    in_b1 = jnp.logical_and(row >= tp, row < m_total)         # rows of x_o[1]
    # sigmoid > 0 strictly, so 0.0 is a safe masked-fill / init identity for max.
    max_b0 = jnp.max(jnp.where(in_b0, s, 0.0), axis=0, keepdims=True)   # (1, 128)
    max_b1 = jnp.max(jnp.where(in_b1, s, 0.0), axis=0, keepdims=True)   # (1, 128)

    out_row = jax.lax.broadcasted_iota(jnp.int32, (8, nk), 0)
    tile_out = jnp.where(out_row == 0, max_b0,
                         jnp.where(out_row == 1, max_b1, 0.0))          # (8, 128)
    out_ref[...] = jnp.maximum(out_ref[...], tile_out)


def dvsa_scores_max_pallas(x2d, w_t, b_row, kt, *, tp):
    # x2d: (M, K) bf16   w_t: (K, E) bf16   b_row: (1, E) f32   kt: (E, NK=128) bf16
    # returns (8, NK) f32: row 0 = max over batch-0 rows, row 1 = max over batch-1 rows.
    M, K = x2d.shape
    E = w_t.shape[1]
    NK = kt.shape[1]

    # Canonical shape-scaling path: tile M at <=512 rows, keep W / b / kt resident
    # (index_map -> (0,0)).  With bf16 operands a 512-row tile is a few hundred KiB,
    # far under v7x's 32 MiB scoped-VMEM limit even with double buffering.
    TM = min(512, M)
    grid_m = pl.cdiv(M, TM)

    cost = pl.CostEstimate(
        flops=2 * M * (K * E + E * NK),
        transcendentals=M * NK,                               # sigmoid
        bytes_accessed=(x2d.size * 2 + w_t.size * 2 + kt.size * 2
                        + b_row.size * 4 + 8 * NK * 4),
    )

    # NOTE: the M axis must stay "arbitrary" because the (8,128) output is a max-accumulator
    # across it.  TODO(synk): for very large M on v7x (2 TCs), switch to per-tile max outputs
    # + a wrapper-side max so the axis can be marked "parallel".
    return pl.pallas_call(
        partial(_dvsa_fused_kernel, tp=tp, m_total=M, tm=TM),
        out_shape=jax.ShapeDtypeStruct((8, NK), jnp.float32),
        grid=(grid_m,),
        in_specs=[
            pl.BlockSpec((TM, K), lambda i: (i, 0)),          # activations: streamed tiles
            pl.BlockSpec((K, E), lambda i: (0, 0)),           # weights: resident
            pl.BlockSpec((1, E), lambda i: (0, 0)),           # bias: resident
            pl.BlockSpec((E, NK), lambda i: (0, 0)),          # packed keys: resident
        ],
        out_specs=pl.BlockSpec((8, NK), lambda i: (0, 0)),
        compiler_params=pltpu.CompilerParams(
            dimension_semantics=("arbitrary",),
            # let XLA fuse the wrapper transpose/reshape/bf16-cast into operand 0 instead of
            # materializing a separate HBM copy of the activation tensor.
            allow_input_fusion=[True, False, False, False],
        ),
        cost_estimate=cost,
    )(x2d, w_t, b_row, kt)


# ---------------------------------------------------------------------------
# Plain-JAX glue: tiny object-interaction transformer + fc head (jitted with the rest)
# ---------------------------------------------------------------------------
def _linear(x, w, b=None):
    y = x @ w.T
    if b is not None:
        y = y + b
    return y


def _layer_norm(x, g, b, eps=1e-6):
    # matches the custom LayerNorm used by the referenced Transformer (std, eps outside sqrt)
    mean = jnp.mean(x, axis=-1, keepdims=True)
    std = jnp.std(x, axis=-1, keepdims=True, ddof=1)
    return g * (x - mean) / (std + eps) + b


def _positional_encodings(n_pos, d):
    pos = jnp.arange(n_pos, dtype=jnp.float32)[:, None]
    chan = jnp.arange(d)
    exponent = (chan - (chan % 2)).astype(jnp.float32) / d
    div = jnp.power(10000.0, exponent)[None, :]
    ang = pos / div
    return jnp.where((chan % 2 == 0)[None, :], jnp.sin(ang), jnp.cos(ang))


def _multihead_attn(x, p, n_heads, d_model, key_mask):
    q, k, v = _linear(x, p["wq"]), _linear(x, p["wk"]), _linear(x, p["wv"])
    qs, ks, vs = (jnp.split(t, n_heads, axis=-1) for t in (q, k, v))
    scale = math.sqrt(d_model)  # reference transformer scales by full d_model (not per-head)
    outs = []
    for qh, kh, vh in zip(qs, ks, vs):
        dots = jnp.einsum("bld,bmd->blm", qh, kh) / scale
        # mask out invalid (padding) key tokens so valid queries exactly match the
        # reference's `attn_key[0:1, :num_pos_obj]` slicing (objects are front-packed).
        dots = jnp.where(key_mask[None, None, :], dots, jnp.float32(-1e30))
        a = jax.nn.softmax(dots, axis=-1)
        outs.append(jnp.einsum("blm,bmd->bld", a, vh))
    return _linear(jnp.concatenate(outs, axis=-1), p["wo"])


def obj_interact_transformer(x, p, n_heads, d_model, key_mask):
    # TODO(synk): the `Transformer` class is not defined in model/dvsa.py; this reproduces the
    # 1-layer encoder it references (pos-enc + MultiHead + post-LN residual + FFN), eval mode.
    x = x + _positional_encodings(x.shape[1], x.shape[2])[None]
    h = _layer_norm(x + _multihead_attn(x, p, n_heads, d_model, key_mask),
                    p["ln1_g"], p["ln1_b"])
    ff = _linear(jax.nn.relu(_linear(h, p["ff_w1"], p["ff_b1"])), p["ff_w2"], p["ff_b2"])
    return _layer_norm(h + ff, p["ln2_g"], p["ln2_b"])


# ---------------------------------------------------------------------------
# Parameters (deterministic synthetic init)
# ---------------------------------------------------------------------------
def init_params(key, num_class, input_size, enc_size, hidden_size):
    ks = jax.random.split(key, 12)

    def nrm(k, shape, scale=0.02):
        return (scale * jax.random.normal(k, shape)).astype(jnp.float32)

    feat_w = nrm(ks[0], (enc_size, input_size))             # nn.Linear(input_size, enc_size)
    return {
        # pre-transposed ONCE at init, stored bf16 (MXU-native; halves the weight DMA).
        # TODO(synk): if weights are ever quantized below bf16, target fp8 (v7x MXU has no int8).
        "feat_w_t": jnp.transpose(feat_w).astype(jnp.bfloat16),     # (K, E)
        "feat_b": jnp.zeros((enc_size,), jnp.float32),
        "emb": nrm(ks[1], (num_class + 1, enc_size), 0.1),  # nn.Embedding(num_class+1, enc)
        "tx": {
            "wq": nrm(ks[2], (enc_size, enc_size)),
            "wk": nrm(ks[3], (enc_size, enc_size)),
            "wv": nrm(ks[4], (enc_size, enc_size)),
            "wo": nrm(ks[5], (enc_size, enc_size)),
            "ln1_g": jnp.ones((enc_size,), jnp.float32),
            "ln1_b": jnp.zeros((enc_size,), jnp.float32),
            "ff_w1": nrm(ks[6], (hidden_size, enc_size)),
            "ff_b1": jnp.zeros((hidden_size,), jnp.float32),
            "ff_w2": nrm(ks[7], (enc_size, hidden_size)),
            "ff_b2": jnp.zeros((enc_size,), jnp.float32),
            "ln2_g": jnp.ones((enc_size,), jnp.float32),
            "ln2_b": jnp.zeros((enc_size,), jnp.float32),
        },
        "fc1_w": nrm(ks[8], (enc_size // 2, enc_size * 2)),  # obj_interact_fc
        "fc1_b": jnp.zeros((enc_size // 2,), jnp.float32),
        "fc2_w": nrm(ks[9], (5, enc_size // 2)),
        "fc2_b": jnp.zeros((5,), jnp.float32),
    }


# ---------------------------------------------------------------------------
# DVSA forward (fully jittable: no host syncs)
# ---------------------------------------------------------------------------
def dvsa_forward(params, x_o, obj, *, num_class, num_frm=5, n_heads=4):
    N_in, C_in, T, P = x_o.shape
    enc = params["feat_w_t"].shape[1]
    O = obj.shape[1]
    TP = T * P
    assert N_in == 2  # the torch forward stacks [x_o[0], x_o[1], x_o[0]]

    # ---- fused Pallas hot path --------------------------------------------------
    # permute(0,2,3,1) + flatten rows; channel axis last (lane dim).  bf16 cast here
    # (fused into the pallas_call operand via allow_input_fusion) halves HBM traffic.
    # TODO(synk): if multiple clips are processed, batch their rows into this single
    # pallas_call so M per MXU pass is >=256 (fills the v6e/v7x 256x256 systolic array).
    x2d = jnp.transpose(x_o, (0, 2, 3, 1)).reshape(N_in * TP, C_in).astype(jnp.bfloat16)

    inv_sqrt_c = 1.0 / math.sqrt(enc)
    k0 = params["emb"][obj[0]]                               # attn_key[0] == attn_key[1]
    k1 = params["emb"][obj[1]]                               # attn_key[2]
    keys = jnp.concatenate([k0, k1], axis=0)                 # (2*O, enc) f32
    NK = 128                                                 # lane-dense key-column count
    assert 2 * O <= NK, "lane-dense key packing requires 2*O <= 128"
    # fold 1/sqrt(C) in f32, single bf16 rounding, pad to 128 lanes.  Padded columns give
    # sigmoid(0)=0.5 in the kernel's max rows but live at columns >= 2*O, which are never read.
    kt = jnp.pad((keys * inv_sqrt_c).T.astype(jnp.bfloat16), ((0, 0), (0, NK - 2 * O)))

    mx = dvsa_scores_max_pallas(
        x2d, params["feat_w_t"], params["feat_b"][None, :], kt, tp=TP)   # (8, 128)

    max_pos = mx[0, :O]                                      # max over batch-0 rows vs k0
    max_neg1 = mx[1, :O]                                     # max over batch-1 rows vs k0
    max_neg2 = mx[0, O:2 * O]                                # max over batch-0 rows vs k1

    # On-device replacement for the reference's .item() counts (objects are front-packed:
    # entries < num_class come first, padded with the null index num_class).
    valid_pos = obj[0] < num_class
    valid_neg = obj[1] < num_class
    num_pos = jnp.sum(valid_pos).astype(jnp.float32)
    num_neg = jnp.sum(valid_neg).astype(jnp.float32)
    num_pos_safe = jnp.maximum(num_pos, 1.0)                 # NaN guard if no valid objects
    num_neg_safe = jnp.maximum(num_neg, 1.0)

    def masked_mean(v, mask, cnt):
        return jnp.sum(jnp.where(mask, v, 0.0)) / cnt

    pos_s = masked_mean(max_pos, valid_pos, num_pos_safe)
    neg1_s = masked_mean(max_neg1, valid_pos, num_pos_safe)
    neg2_s = masked_mean(max_neg2, valid_neg, num_neg_safe)
    out = jnp.stack([jnp.stack([pos_s, neg1_s]), jnp.stack([pos_s, neg2_s])])  # (2, 2)

    # ---- tiny object-interaction transformer + fc head (plain JAX, same jit) ----
    key_pos = k0[None]                                        # (1, O, enc)
    emb_tx = obj_interact_transformer(key_pos, params["tx"], n_heads, enc, valid_pos)
    emb_cat = jnp.concatenate([emb_tx, key_pos], axis=2)      # (1, O, 2*enc)
    h = jax.nn.relu(_linear(emb_cat, params["fc1_w"], params["fc1_b"]))
    obj_attn_emb = jax.nn.sigmoid(_linear(h, params["fc2_w"], params["fc2_b"]))  # (1, O, 5)

    itv = math.ceil(T / 5)
    cols = []
    for i in range(5):
        l = min(itv * (i + 1), T) - itv * i
        if l > 0:
            cols.append(jnp.broadcast_to(obj_attn_emb[:, :, i:i + 1], (1, O, l)))
    obj_attn_T = jnp.concatenate(cols, axis=2)[0]             # (O, T)
    assert obj_attn_T.shape[1] == num_frm

    lw = jnp.sum(jnp.where(valid_pos[:, None], obj_attn_T, 0.0), axis=0) / num_pos_safe  # (T,)
    loss_weigh = jnp.concatenate([lw, lw])[:, None]           # (2*num_frm, 1)

    return out, loss_weigh


# ---------------------------------------------------------------------------
if __name__ == "__main__":
    num_class = 4
    input_size = 256
    enc_size = 128
    hidden_size = 64
    n_heads = 4
    T, P = 5, 8          # T must equal num_frm=5 (asserted by the torch forward)

    key = jax.random.PRNGKey(0)
    kp, kx = jax.random.split(key)
    params = init_params(kp, num_class, input_size, enc_size, hidden_size)

    x_o = jax.random.normal(kx, (2, input_size, T, P), dtype=jnp.float32)
    # index == num_class is the "null object" slot; valid objects are < num_class (front-packed)
    obj = jnp.array([[0, 1, 2, 4, 4],
                     [1, 3, 4, 4, 4]], dtype=jnp.int32)

    fwd = jax.jit(partial(dvsa_forward, num_class=num_class, num_frm=5, n_heads=n_heads))
    out, loss_weigh = fwd(params, x_o, obj)
    jax.block_until_ready(out)
    jax.block_until_ready(loss_weigh)
    assert out.shape == (2, 2)
    assert loss_weigh.shape == (2 * 5, 1)
    print("KERNEL_OK")
</pallas_src>

<mosaic_0001>
module attributes {stable_mosaic.version = 11 : i64} {
  func.func @_dvsa_fused_kernel(%arg0: i32, %arg1: memref<80x256xbf16, #tpu.memory_space<vmem>>, %arg2: memref<256x128xbf16, #tpu.memory_space<vmem>>, %arg3: memref<1x128xf32, #tpu.memory_space<vmem>>, %arg4: memref<128x128xbf16, #tpu.memory_space<vmem>>, %arg5: memref<8x128xf32, #tpu.memory_space<vmem>>) attributes {dimension_semantics = [#tpu.dimension_semantics<arbitrary>], iteration_bounds = array<i64: 1>, scalar_prefetch = 0 : i64, scratch_operands = 0 : i64, tpu.core_type = #tpu.core_type<tc>, window_params = [{transform_indices = @transform_0, window_bounds = array<i64: 80, 256>}, {pipeline_mode = #tpu.pipeline_mode<synchronous>, transform_indices = @transform_1, window_bounds = array<i64: 256, 128>}, {pipeline_mode = #tpu.pipeline_mode<synchronous>, transform_indices = @transform_2, window_bounds = array<i64: 1, 128>}, {pipeline_mode = #tpu.pipeline_mode<synchronous>, transform_indices = @transform_3, window_bounds = array<i64: 128, 128>}, {pipeline_mode = #tpu.pipeline_mode<synchronous>, transform_indices = @transform_4, window_bounds = array<i64: 8, 128>}]} {
    %c0_i32 = arith.constant 0 : i32
    %0 = arith.cmpi eq, %arg0, %c0_i32 : i32
    %1 = arith.extui %0 : i1 to i32
    %c0_i32_0 = arith.constant 0 : i32
    %2 = arith.cmpi ne, %1, %c0_i32_0 : i32
    scf.if %2 {
      %cst_23 = arith.constant 0.000000e+00 : f32
      %53 = vector.broadcast %cst_23 : f32 to vector<8x128xf32>
      %c0_24 = arith.constant 0 : index
      %c0_25 = arith.constant 0 : index
      %54 = vector.load %arg5[%c0_24, %c0_25] : memref<8x128xf32, #tpu.memory_space<vmem>>, vector<8x128xf32>
      tpu.vector_store %arg5[%c0_24, %c0_25], %53 {strides = array<i32>} : memref<8x128xf32, #tpu.memory_space<vmem>>, vector<8x128xf32>,
    } else {
    }
    %c0 = arith.constant 0 : index
    %c0_1 = arith.constant 0 : index
    %3 = vector.load %arg1[%c0, %c0_1] : memref<80x256xbf16, #tpu.memory_space<vmem>>, vector<80x256xbf16>
    %c0_2 = arith.constant 0 : index
    %c0_3 = arith.constant 0 : index
    %4 = vector.load %arg2[%c0_2, %c0_3] : memref<256x128xbf16, #tpu.memory_space<vmem>>, vector<256x128xbf16>
    %cst = arith.constant dense<0.000000e+00> : vector<80x128xf32>
    %5 = tpu.matmul %3, %4, %cst {dimension_numbers = #tpu.dot_dimension_numbers<[1], [0], [0], [1], [0, 0, 1, 1], [], []>} : vector<80x256xbf16>, vector<256x128xbf16>, vector<80x128xf32> -> vector<80x128xf32>
    %c0_4 = arith.constant 0 : index
    %c0_5 = arith.constant 0 : index
    %6 = vector.load %arg3[%c0_4, %c0_5] : memref<1x128xf32, #tpu.memory_space<vmem>>, vector<1x128xf32>
    %7 = vector.broadcast %6 : vector<1x128xf32> to vector<80x128xf32>
    %8 = arith.addf %5, %7 : vector<80x128xf32>
    %cst_6 = arith.constant 0.000000e+00 : f32
    %9 = vector.broadcast %cst_6 : f32 to vector<80x128xf32>
    %10 = arith.maximumf %8, %9 : vector<80x128xf32>
    %11 = arith.truncf %10 : vector<80x128xf32> to vector<80x128xbf16>
    %c0_7 = arith.constant 0 : index
    %c0_8 = arith.constant 0 : index
    %12 = vector.load %arg4[%c0_7, %c0_8] : memref<128x128xbf16, #tpu.memory_space<vmem>>, vector<128x128xbf16>
    %cst_9 = arith.constant dense<0.000000e+00> : vector<80x128xf32>
    %13 = tpu.matmul %11, %12, %cst_9 {dimension_numbers = #tpu.dot_dimension_numbers<[1], [0], [0], [1], [0, 0, 1, 1], [], []>} : vector<80x128xbf16>, vector<128x128xbf16>, vector<80x128xf32> -> vector<80x128xf32>
    %14 = arith.negf %13 : vector<80x128xf32>
    %15 = math.exp %14 : vector<80x128xf32>
    %cst_10 = arith.constant 1.000000e+00 : f32
    %16 = vector.broadcast %cst_10 : f32 to vector<80x128xf32>
    %17 = arith.addf %16, %15 : vector<80x128xf32>
    %18 = arith.divf %16, %17 : vector<80x128xf32>
    %c80_i32 = arith.constant 80 : i32
    %19 = arith.muli %c80_i32, %arg0 : i32
    %20 = tpu.iota {dimensions = array<i32: 0>} : vector<80x128xi32>
    %21 = vector.broadcast %19 : i32 to vector<80x128xi32>
    %22 = arith.addi %21, %20 : vector<80x128xi32>
    %c40_i32 = arith.constant 40 : i32
    %23 = vector.broadcast %c40_i32 : i32 to vector<80x128xi32>
    %24 = arith.cmpi slt, %22, %23 : vector<80x128xi32>
    %c40_i32_11 = arith.constant 40 : i32
    %25 = vector.broadcast %c40_i32_11 : i32 to vector<80x128xi32>
    %26 = arith.cmpi sge, %22, %25 : vector<80x128xi32>
    %c80_i32_12 = arith.constant 80 : i32
    %27 = vector.broadcast %c80_i32_12 : i32 to vector<80x128xi32>
    %28 = arith.cmpi slt, %22, %27 : vector<80x128xi32>
    %29 = arith.andi %26, %28 : vector<80x128xi1>
    %cst_13 = arith.constant 0.000000e+00 : f32
    %30 = vector.broadcast %cst_13 : f32 to vector<80x128xf32>
    %31 = arith.select %24, %18, %30 : vector<80x128xi1>, vector<80x128xf32>
    %cst_14 = arith.constant dense<0xFF800000> : vector<128xf32>
    %32 = vector.multi_reduction <maximumf>, %31, %cst_14 [0] : vector<80x128xf32> to vector<128xf32>
    %33 = vector.shape_cast %32 : vector<128xf32> to vector<1x128xf32>
    %cst_15 = arith.constant 0.000000e+00 : f32
    %34 = vector.broadcast %cst_15 : f32 to vector<80x128xf32>
    %35 = arith.select %29, %18, %34 : vector<80x128xi1>, vector<80x128xf32>
    %cst_16 = arith.constant dense<0xFF800000> : vector<128xf32>
    %36 = vector.multi_reduction <maximumf>, %35, %cst_16 [0] : vector<80x128xf32> to vector<128xf32>
    %37 = vector.shape_cast %36 : vector<128xf32> to vector<1x128xf32>
    %38 = tpu.iota {dimensions = array<i32: 0>} : vector<8x128xi32>
    %c0_i32_17 = arith.constant 0 : i32
    %39 = vector.broadcast %c0_i32_17 : i32 to vector<8x128xi32>
    %40 = arith.cmpi eq, %38, %39 : vector<8x128xi32>
    %c1_i32 = arith.constant 1 : i32
    %41 = vector.broadcast %c1_i32 : i32 to vector<8x128xi32>
    %42 = arith.cmpi eq, %38, %41 : vector<8x128xi32>
    %cst_18 = arith.constant 0.000000e+00 : f32
    %43 = vector.shape_cast %37 : vector<1x128xf32> to vector<1x128xf32>
    %44 = vector.broadcast %43 : vector<1x128xf32> to vector<8x128xf32>
    %45 = vector.broadcast %cst_18 : f32 to vector<8x128xf32>
    %46 = arith.select %42, %44, %45 : vector<8x128xi1>, vector<8x128xf32>
    %47 = vector.shape_cast %33 : vector<1x128xf32> to vector<1x128xf32>
    %48 = vector.broadcast %47 : vector<1x128xf32> to vector<8x128xf32>
    %49 = arith.select %40, %48, %46 : vector<8x128xi1>, vector<8x128xf32>
    %c0_19 = arith.constant 0 : index
    %c0_20 = arith.constant 0 : index
    %50 = vector.load %arg5[%c0_19, %c0_20] : memref<8x128xf32, #tpu.memory_space<vmem>>, vector<8x128xf32>
    %51 = arith.maximumf %50, %49 : vector<8x128xf32>
    %c0_21 = arith.constant 0 : index
    %c0_22 = arith.constant 0 : index
    %52 = vector.load %arg5[%c0_21, %c0_22] : memref<8x128xf32, #tpu.memory_space<vmem>>, vector<8x128xf32>
    tpu.vector_store %arg5[%c0_21, %c0_22], %51 {strides = array<i32>} : memref<8x128xf32, #tpu.memory_space<vmem>>, vector<8x128xf32>,
    return
  }
  func.func @transform_0(%arg0: i32) -> (i32, i32) {
    %c0_i32 = arith.constant 0 : i32
    %c0_i32_0 = arith.constant 0 : i32
    return %arg0, %c0_i32 : i32, i32
  }
  func.func @transform_1(%arg0: i32) -> (i32, i32) {
    %c0_i32 = arith.constant 0 : i32
    %c0_i32_0 = arith.constant 0 : i32
    %c0_i32_1 = arith.constant 0 : i32
    return %c0_i32, %c0_i32_0 : i32, i32
  }
  func.func @transform_2(%arg0: i32) -> (i32, i32) {
    %c0_i32 = arith.constant 0 : i32
    %c0_i32_0 = arith.constant 0 : i32
    %c0_i32_1 = arith.constant 0 : i32
    return %c0_i32, %c0_i32_0 : i32, i32
  }
  func.func @transform_3(%arg0: i32) -> (i32, i32) {
    %c0_i32 = arith.constant 0 : i32
    %c0_i32_0 = arith.constant 0 : i32
    %c0_i32_1 = arith.constant 0 : i32
    return %c0_i32, %c0_i32_0 : i32, i32
  }
  func.func @transform_4(%arg0: i32) -> (i32, i32) {
    %c0_i32 = arith.constant 0 : i32
    %c0_i32_0 = arith.constant 0 : i32
    %c0_i32_1 = arith.constant 0 : i32
    return %c0_i32, %c0_i32_0 : i32, i32
  }
}

</mosaic_0001>

<bundles_post_ra>
// kernel: dvsa_forward.1
= control target key start
LH: loop header
LB: loop body
LE: loop exit
PB: predicated region body
PF: predicated region fallthrough
CT: control target
= control target key end

     0   :  { %v848_v1 = vmov 0.0   ;;  %vm849_vm0 = vmmov 0   ;;  %s1001_s1 = inlined_call_operand.vmem [shape: bf16[256,128], index: 1, kind: input, shape index: {}]   ;;  %s1002_s0 = inlined_call_operand.vmem [shape: bf16[80,256], index: 0, kind: input, shape index: {}]   ;;  %s1003_s3 = inlined_call_operand.vmem [shape: bf16[128,128], index: 3, kind: input, shape index: {}]   ;;  %s1004_s2 = inlined_call_operand.vmem [shape: f32[1,128], index: 2, kind: input, shape index: {}]   ;;  %s1005_s4 = inlined_call_operand.vmem [shape: f32[8,128], index: 4, kind: output, shape index: {}]  }
   0x1   :  { %v769_v0 = vld [vmem:[%s1001_s1 + $0x40] sm:$0xff]   ;;  %731 = vmatprep.subr.bf16.mxu1 %v848_v1  ;;  %v771_v3 = vld [vmem:[%s1001_s1 + $0x48] sm:$0xff]   ;;  %v773_v5 = vld [vmem:[%s1001_s1 + $0x50] sm:$0xff]   ;;  %747 = vmatprep.mubr.msk.bf16.mxu1 %vm849_vm0, %v848_v1 }
   0x2   :  { %v770_v2 = vld [vmem:[%s1001_s1] sm:$0xff]   ;;  %672 = vmatprep.subr.bf16.mxu0 %v769_v0  ;;  %v772_v4 = vld [vmem:[%s1001_s1 + $0x8] sm:$0xff]   ;;  %v774_v6 = vld [vmem:[%s1001_s1 + $0x10] sm:$0xff]  }
   0x3   :  { %673 = vmatpush3.bf16.msra.mxu0 %v770_v2  ;;  %v775_v7 = vld [vmem:[%s1001_s1 + $0x58] sm:$0xff]   ;;  %v777_v9 = vld [vmem:[%s1001_s1 + $0x60] sm:$0xff]   ;;  %v779_v11 = vld [vmem:[%s1001_s1 + $0x68] sm:$0xff]  }
   0x4   :  { %674 = vmatprep.subr.bf16.mxu0 %v771_v3  ;;  %v776_v8 = vld [vmem:[%s1001_s1 + $0x18] sm:$0xff]   ;;  %v778_v10 = vld [vmem:[%s1001_s1 + $0x20] sm:$0xff]   ;;  %v780_v13 = vld [vmem:[%s1001_s1 + $0x28] sm:$0xff]  }
   0x5   :  { %v787_v12 = vld [vmem:[%s1002_s0 + $0x4] ss:$8 sps:$4 sm:$0xff]   ;;  %v781_v14 = vld [vmem:[%s1001_s1 + $0x70] sm:$0xff]   ;;  %v783_v17 = vld [vmem:[%s1001_s1 + $0x78] sm:$0xff]  }
   0x6   :  { %250 = vmatprep.mubr.bf16.mxu0 %v787_v12  ;;  %v782_v15 = vld [vmem:[%s1001_s1 + $0x30] sm:$0xff]   ;;  %v800_v16 = vld [vmem:[%s1003_s3] sm:$0xff]   ;;  %v801_v18 = vld [vmem:[%s1003_s3 + $0x8] sm:$0xff]  }
   0x7   :  { %675 = vmatpush3.bf16.msra.mxu0 %v772_v4  ;;  %732 = vmatpush3.bf16.msra.mxu1 %v800_v16  ;;  %v784_v19 = vld [vmem:[%s1001_s1 + $0x38] sm:$0xff]   ;;  %v802_v20 = vld [vmem:[%s1003_s3 + $0x10] sm:$0xff]   ;;  %v785_v21 = vld [vmem:[%s1002_s0] ss:$8 sps:$4 sm:$0xff]  }
   0x8   :  { %676 = vmatprep.subr.bf16.mxu0 %v773_v5  ;;  %733 = vmatprep.subr.bf16.mxu1 %v848_v1  ;;  %v788_v22 = vld [vmem:[%s1002_s0 + $0x14] ss:$8 sps:$4 sm:$0xff]   ;;  %v804_v24 = vld [vmem:[%s1003_s3 + $0x20] sm:$0xff]   ;;  %v790_v25 = vld [vmem:[%s1002_s0 + $0x10] ss:$8 sps:$4 sm:$0xff]  }
   0x9   :  { %v803_v23 = vld [vmem:[%s1003_s3 + $0x18] sm:$0xff]   ;;  %v791_v26 = vld [vmem:[%s1002_s0 + $0x24] ss:$8 sps:$4 sm:$0xff]   ;;  %v793_v27 = vld [vmem:[%s1002_s0 + $0x20] ss:$8 sps:$4 sm:$0xff]  }
   0xa   :  { %v794_v28 = vld [vmem:[%s1002_s0 + $0x34] ss:$8 sps:$4 sm:$0xff]   ;;  %v796_v29 = vld [vmem:[%s1002_s0 + $0x30] ss:$8 sps:$4 sm:$0xff]   ;;  %v797_v30 = vld [vmem:[%s1002_s0 + $0x44] ss:$8 sps:$4 sm:$0xff]  }
   0xb   :  { %677 = vmatpush3.bf16.msra.mxu0 %v774_v6  ;;  %734 = vmatpush3.bf16.msra.mxu1 %v801_v18  ;;  %v799_v31 = vld [vmem:[%s1002_s0 + $0x40] ss:$8 sps:$4 sm:$0xff]   ;;  %v806_v33 = vld [vmem:[%s1003_s3 + $0x30] sm:$0xff]   ;;  %v807_v34 = vld [vmem:[%s1003_s3 + $0x38] sm:$0xff]  }
   0xc   :  { %678 = vmatprep.subr.bf16.mxu0 %v775_v7  ;;  %735 = vmatprep.subr.bf16.mxu1 %v848_v1  ;;  %v805_v32 = vld [vmem:[%s1003_s3 + $0x28] sm:$0xff]   ;;  %v627_v36 = vld [vmem:[%s1004_s2] ss:$0 sm:$0xff] }
   0xf   :  { %679 = vmatpush3.bf16.msra.mxu0 %v776_v8  ;;  %736 = vmatpush3.bf16.msra.mxu1 %v802_v20 }
  0x10   :  { %680 = vmatprep.subr.bf16.mxu0 %v777_v9  ;;  %737 = vmatprep.subr.bf16.mxu1 %v848_v1 }
  0x13   :  { %681 = vmatpush3.bf16.msra.mxu0 %v778_v10  ;;  %738 = vmatpush3.bf16.msra.mxu1 %v803_v23 }
  0x14   :  { %682 = vmatprep.subr.bf16.mxu0 %v779_v11  ;;  %739 = vmatprep.subr.bf16.mxu1 %v848_v1 }
  0x17   :  { %683 = vmatpush3.bf16.msra.mxu0 %v780_v13  ;;  %740 = vmatpush3.bf16.msra.mxu1 %v804_v24 }
  0x18   :  { %684 = vmatprep.subr.bf16.mxu0 %v781_v14  ;;  %741 = vmatprep.subr.bf16.mxu1 %v848_v1 }
  0x1b   :  { %685 = vmatpush3.bf16.msra.mxu0 %v782_v15  ;;  %742 = vmatpush3.bf16.msra.mxu1 %v805_v32 }
  0x1c   :  { %686 = vmatprep.subr.bf16.mxu0 %v783_v17  ;;  %743 = vmatprep.subr.bf16.mxu1 %v848_v1 }
  0x1f   :  { %687 = vmatpush3.bf16.msra.mxu0 %v784_v19  ;;  %744 = vmatpush3.bf16.msra.mxu1 %v806_v33 }
  0x20   :  { %745 = vmatprep.subr.bf16.mxu1 %v848_v1 }
  0x22   :  { %251 = vmatmul.mubr.bf16.vlgmr.msra.gmra.mrb[0].mxu0 %v785_v21 }
  0x23   :  { %258 = vmatprep.mubr.bf16.mxu0 %v788_v22  ;;  %746 = vmatpush3.bf16.msra.mxu1 %v807_v34 }
  0x2a   :  { %259 = vmatmul.mubr.bf16.gmra.mrb[4].mxu0 %v790_v25 }
  0x2b   :  { %266 = vmatprep.mubr.bf16.mxu0 %v791_v26 }
  0x32   :  { %267 = vmatmul.mubr.bf16.gmra.mrb[8].mxu0 %v793_v27 }
  0x33   :  { %274 = vmatprep.mubr.bf16.mxu0 %v794_v28 }
  0x3a   :  { %275 = vmatmul.mubr.bf16.gmra.mrb[12].mxu0 %v796_v29 }
  0x3b   :  { %282 = vmatprep.mubr.bf16.mxu0 %v797_v30 }
  0x42   :  { %283 = vmatmul.mubr.bf16.gmra.mrb[16].mxu0 %v799_v31 }
  0xf5   :  { %v688_v35 = vpop.f32.mrb[0].mxu0 }
  0xf6   :  { %v689_v37 = vpop.f32.mrb[1].mxu0 }
  0xf7   :  { %v690_v38 = vadd.f32 %v689_v37, %v688_v35  ;;  %v691_v39 = vpop.f32.mrb[2].mxu0 }
  0xf8   :  { %v692_v40 = vpop.f32.mrb[3].mxu0 }
  0xf9   :  { %v253_v41 = vadd.f32 %v690_v38, %v627_v36  ;;  %v693_v42 = vadd.f32 %v692_v40, %v691_v39 }
  0xfb   :  { %v256_v43 = vadd.f32 %v693_v42, %v627_v36  ;;  %v291_v44 = vmax.f32 %v253_v41, 0.0 }
  0xfd   :  { %v292_v45 = vmax.f32 %v256_v43, 0.0  ;;  %v694_v46 = vpop.f32.mrb[4].mxu0 }
  0xfe   :  { %v695_v47 = vpop.f32.mrb[5].mxu0 }
  0xff   :  { %v696_v48 = vadd.f32 %v695_v47, %v694_v46  ;;  %v697_v49 = vpop.f32.mrb[6].mxu0  ;;  %v301_v50 = vpack.c.bf16 %v292_v45, %v291_v44 }
 0x100   :  { %v698_v51 = vpop.f32.mrb[7].mxu0 }
 0x101   :  { %v261_v52 = vadd.f32 %v696_v48, %v627_v36  ;;  %v699_v53 = vadd.f32 %v698_v51, %v697_v49  ;;  %748 = vmatmul.mubr.bf16.vlgmr.msra.gmra.mrb[0].mxu1 %v301_v50 }
 0x102   :  { %751 = vmatprep.mubr.msk.bf16.mxu1 %vm849_vm0, %v848_v1 }
 0x103   :  { %v264_v54 = vadd.f32 %v699_v53, %v627_v36  ;;  %v293_v55 = vmax.f32 %v261_v52, 0.0 }
 0x105   :  { %v294_v56 = vmax.f32 %v264_v54, 0.0  ;;  %v700_v57 = vpop.f32.mrb[8].mxu0 }
 0x106   :  { %v701_v58 = vpop.f32.mrb[9].mxu0 }
 0x107   :  { %v702_v59 = vadd.f32 %v701_v58, %v700_v57  ;;  %v703_v60 = vpop.f32.mrb[10].mxu0  ;;  %v302_v61 = vpack.c.bf16 %v294_v56, %v293_v55 }
 0x108   :  { %v704_v62 = vpop.f32.mrb[11].mxu0 }
 0x109   :  { %v269_v63 = vadd.f32 %v702_v59, %v627_v36  ;;  %v705_v0 = vadd.f32 %v704_v62, %v703_v60  ;;  %752 = vmatmul.mubr.bf16.gmra.mrb[4].mxu1 %v302_v61 }
 0x10a   :  { %755 = vmatprep.mubr.msk.bf16.mxu1 %vm849_vm0, %v848_v1 }
 0x10b   :  { %v272_v2 = vadd.f32 %v705_v0, %v627_v36  ;;  %v295_v3 = vmax.f32 %v269_v63, 0.0 }
 0x10d   :  { %v296_v4 = vmax.f32 %v272_v2, 0.0  ;;  %v706_v5 = vpop.f32.mrb[12].mxu0 }
 0x10e   :  { %v707_v6 = vpop.f32.mrb[13].mxu0 }
 0x10f   :  { %v708_v7 = vadd.f32 %v707_v6, %v706_v5  ;;  %v709_v8 = vpop.f32.mrb[14].mxu0  ;;  %v303_v9 = vpack.c.bf16 %v296_v4, %v295_v3 }
 0x110   :  { %v710_v10 = vpop.f32.mrb[15].mxu0 }
 0x111   :  { %v277_v11 = vadd.f32 %v708_v7, %v627_v36  ;;  %v711_v12 = vadd.f32 %v710_v10, %v709_v8  ;;  %756 = vmatmul.mubr.bf16.gmra.mrb[8].mxu1 %v303_v9 }
 0x112   :  { %759 = vmatprep.mubr.msk.bf16.mxu1 %vm849_vm0, %v848_v1 }
 0x113   :  { %v280_v13 = vadd.f32 %v711_v12, %v627_v36  ;;  %v297_v14 = vmax.f32 %v277_v11, 0.0 }
 0x115   :  { %v298_v15 = vmax.f32 %v280_v13, 0.0  ;;  %v712_v16 = vpop.f32.mrb[16].mxu0 }
 0x116   :  { %v713_v17 = vpop.f32.mrb[17].mxu0 }
 0x117   :  { %v714_v18 = vadd.f32 %v713_v17, %v712_v16  ;;  %v715_v19 = vpop.f32.mrb[18].mxu0  ;;  %v304_v20 = vpack.c.bf16 %v298_v15, %v297_v14 }
 0x118   :  { %v716_v21 = vpop.f32.mrb[19].mxu0 }
 0x119   :  { %v285_v22 = vadd.f32 %v714_v18, %v627_v36  ;;  %v717_v23 = vadd.f32 %v716_v21, %v715_v19  ;;  %760 = vmatmul.mubr.bf16.gmra.mrb[12].mxu1 %v304_v20 }
 0x11a   :  { %763 = vmatprep.mubr.msk.bf16.mxu1 %vm849_vm0, %v848_v1 }
 0x11b   :  { %v288_v24 = vadd.f32 %v717_v23, %v627_v36  ;;  %v299_v25 = vmax.f32 %v285_v22, 0.0 }
 0x11d   :  { %v300_v26 = vmax.f32 %v288_v24, 0.0 }
 0x11f   :  { %v305_v27 = vpack.c.bf16 %v300_v26, %v299_v25 }
 0x121   :  { %764 = vmatmul.mubr.bf16.gmra.mrb[16].mxu1 %v305_v27 }
 0x1d4   :  { %v404_v28 = vpop.f32.mrb[0].mxu1 }
 0x1d5   :  { %v749_v29 = vpop.f32.mrb[1].mxu1  ;;  %v662_v37 = vmul.f32 -1.442695, %v404_v28 }
 0x1d6   :  { %v407_v30 = vpop.f32.mrb[2].mxu1 }
 0x1d7   :  { %v750_v31 = vpop.f32.mrb[3].mxu1  ;;  %v663_v32 = vmul.f32 -1.442695, %v407_v30 }
 0x1d9   :  { %808 = vpow2.f32 %v663_v32 }
 0x1dc   :  { %v412_v33 = vpop.f32.mrb[4].mxu1 }
 0x1dd   :  { %v664_v34 = vmul.f32 -1.442695, %v412_v33  ;;  %v753_v35 = vpop.f32.mrb[5].mxu1 }
 0x1de   :  { %v415_v38 = vpop.f32.mrb[6].mxu1 }
 0x1df   :  { %810 = vpow2.f32 %v664_v34  ;;  %v665_v39 = vmul.f32 -1.442695, %v415_v38  ;;  %v754_v40 = vpop.f32.mrb[7].mxu1 }
 0x1e1   :  { %812 = vpow2.f32 %v665_v39 }
 0x1e2   :  { %814 = vpow2.f32 %v662_v37 }
 0x1e3   :  { %v809_v42 = vpop.eup %808 }
 0x1e4   :  { %v420_v1 = vpop.f32.mrb[8].mxu1  ;;  %v474_v46 = vadd.f32 1.0, %v809_v42 }
 0x1e5   :  { %v666_v36 = vmul.f32 -1.442695, %v420_v1  ;;  %v757_v41 = vpop.f32.mrb[9].mxu1 }
 0x1e6   :  { %v423_v43 = vpop.f32.mrb[10].mxu1 }
 0x1e7   :  { %816 = vpow2.f32 %v666_v36  ;;  %v758_v44 = vpop.f32.mrb[11].mxu1  ;;  %v667_v51 = vmul.f32 -1.442695, %v423_v43 }
 0x1e8   :  { %v504_v44 = vlaneseq }
 0x1e9   :  { %v811_v45 = vpop.eup %810 }
 0x1ea   :  { %v475_v47 = vadd.f32 1.0, %v811_v45 }
 0x1eb   :  { %v813_v48 = vpop.eup %812 }
 0x1ec   :  { %v815_v49 = vpop.eup %814  ;;  %818 = vrcp.f32 %v475_v47  ;;  %v476_v50 = vadd.f32 1.0, %v813_v48  ;;  %v428_v52 = vpop.f32.mrb[12].mxu1  ;;  %v505_v48 = vshrl.u32 %v504_v44, 7 }
 0x1ed   :  { %820 = vrcp.f32 %v474_v46  ;;  %v668_v53 = vmul.f32 -1.442695, %v428_v52  ;;  %v761_v54 = vpop.f32.mrb[13].mxu1  ;;  %v473_v56 = vadd.f32 1.0, %v815_v49 }
 0x1ee   :  { %822 = vrcp.f32 %v476_v50  ;;  %v431_v55 = vpop.f32.mrb[14].mxu1  ;;  %vm617_vm1 = vcmp.eq.s32.totalorder %v505_v48, 1  ;;  %vm616_vm2 = vcmp.eq.s32.totalorder %v505_v48, 0 }
 0x1ef   :  { %824 = vpow2.f32 %v668_v53  ;;  %v669_v57 = vmul.f32 -1.442695, %v431_v55  ;;  %v762_v58 = vpop.f32.mrb[15].mxu1 }
 0x1f0   :  { %826 = vpow2.f32 %v667_v51 }
 0x1f1   :  { %v817_v59 = vpop.eup %816  ;;  %828 = vpow2.f32 %v669_v57 }
 0x1f2   :  { %v477_v60 = vadd.f32 1.0, %v817_v59  ;;  %830 = vrcp.f32 %v473_v56 }
 0x1f4   :  { %832 = vrcp.f32 %v477_v60  ;;  %v436_v61 = vpop.f32.mrb[16].mxu1 }
 0x1f5   :  { %v670_v62 = vmul.f32 -1.442695, %v436_v61  ;;  %v765_v63 = vpop.f32.mrb[17].mxu1 }
 0x1f6   :  { %v819_v0 = vpop.eup %818  ;;  %v439_v2 = vpop.f32.mrb[18].mxu1 }
 0x1f7   :  { %v821_v3 = vpop.eup %820  ;;  %834 = vpow2.f32 %v670_v62  ;;  %v671_v4 = vmul.f32 -1.442695, %v439_v2  ;;  %v766_v5 = vpop.f32.mrb[19].mxu1  ;;  %v578_v8 = vmax.f32 %v819_v0, 0.0 }
 0x1f8   :  { %v823_v6 = vpop.eup %822  ;;  %v577_v16 = vmax.f32 %v821_v3, 0.0 }
 0x1f9   :  { %v825_v7 = vpop.eup %824  ;;  %v579_v9 = vmax.f32 %v823_v6, 0.0  ;;  %836 = vpow2.f32 %v671_v4 }
 0x1fa   :  { %v827_v10 = vpop.eup %826  ;;  %v479_v11 = vadd.f32 1.0, %v825_v7  ;;  %v581_v21 = vmax.f32 %v577_v16, 0.0 }
 0x1fb   :  { %v829_v12 = vpop.eup %828  ;;  %v583_v13 = vmax.f32 %v578_v8, %v579_v9  ;;  %v478_v18 = vadd.f32 1.0, %v827_v10 }
 0x1fc   :  { %838 = vrcp.f32 %v479_v11  ;;  %v480_v14 = vadd.f32 1.0, %v829_v12  ;;  %v831_v15 = vpop.eup %830 }
 0x1fe   :  { %v833_v17 = vpop.eup %832  ;;  %840 = vrcp.f32 %v480_v14 }
 0x1ff   :  { %v576_v19 = vmax.f32 %v831_v15, %v833_v17  ;;  %842 = vrcp.f32 %v478_v18 }
 0x201   :  { %v835_v20 = vpop.eup %834  ;;  %v580_v22 = vmax.f32 %v576_v19, 0.0 }
 0x202   :  { %v481_v23 = vadd.f32 1.0, %v835_v20 }
 0x203   :  { %v837_v24 = vpop.eup %836  ;;  %v582_v25 = vmax.f32 %v580_v22, %v581_v21 }
 0x204   :  { %844 = vrcp.f32 %v481_v23  ;;  %v482_v26 = vadd.f32 1.0, %v837_v24 }
 0x205   :  { %v584_v27 = vmax.f32 %v582_v25, %v583_v13 }
 0x206   :  { %v839_v28 = vpop.eup %838  ;;  %846 = vrcp.f32 %v482_v26 }
 0x207   :  { %v603_v30 = vmax.f32 %v839_v28, 0.0  ;;  %v585_v35 = vrot.slane %v584_v27, 4 }
 0x208   :  { %v841_v29 = vpop.eup %840 }
 0x209   :  { %v604_v31 = vmax.f32 %v841_v29, 0.0  ;;  %v843_v33 = vpop.eup %842  ;;  %v586_v1 = vmax.f32 %v584_v27, %v585_v35 }
 0x20a   :  { %v602_v37 = vmax.f32 %v843_v33, 0.0 }
 0x20b   :  { %v608_v32 = vmax.f32 %v603_v30, %v604_v31  ;;  %v587_v42 = vrot.slane %v586_v1, 2 }
 0x20d   :  { %v588_v46 = vmax.f32 %v586_v1, %v587_v42 }
 0x20e   :  { %v845_v34 = vpop.eup %844 }
 0x20f   :  { %v605_v39 = vmax.f32 %v845_v34, 0.0  ;;  %v589_v50 = vrot.slane %v588_v46, 1 }
 0x210   :  { %v847_v38 = vpop.eup %846 }
 0x211   :  { %v606_v40 = vmax.f32 %v602_v37, %v847_v38  ;;  %v590_v53 = vmax.f32 %v588_v46, %v589_v50 }
 0x213   :  { %v607_v36 = vmax.f32 %v605_v39, %v606_v40 }
 0x215   :  { %v609_v41 = vmax.f32 %v607_v36, %v608_v32 }
 0x217   :  { %v610_v43 = vrot.slane %v609_v41, 4 }
 0x219   :  { %v611_v45 = vmax.f32 %v609_v41, %v610_v43 }
 0x21b   :  { %v612_v47 = vrot.slane %v611_v45, 2 }
 0x21d   :  { %v613_v49 = vmax.f32 %v611_v45, %v612_v47 }
 0x21f   :  { %v614_v51 = vrot.slane %v613_v49, 1 }
 0x221   :  { %v615_v52 = vmax.f32 %v613_v49, %v614_v51 }
 0x223   :  { %v618_v54 = vsel %vm617_vm1, %v615_v52, 0.0 }
 0x224   :  { %v619_v55 = vsel %vm616_vm2, %v590_v53, %v618_v54 }
 0x225   :  { %v621_v56 = vmax.f32 %v619_v55, 0.0 }
 0x227   :  { %622 = vst [vmem:[%s1005_s4] sm:$0xff] %v621_v56 }

</bundles_post_ra>
